<compile_context>
chip_gen: v5e
topology: v5e:2x2
jax: 0.10.0
libtpu: 0.0.40
codegen_flags: <defaults>
</compile_context>

<pallas_src>
import functools

import jax
import jax.numpy as jnp
from jax.experimental import pallas as pl
from jax.experimental.pallas import tpu as pltpu

_LANES = 128


def _round_up(x, m):
    return ((x + m - 1) // m) * m


def _ce_loss_kernel(w_ref, z0_ref, z1_ref, lbl_ref, out_ref, acc_ref):
    """One (tile_r, 128) tile of the weighted-CE sum.

    w_ref  : (2,) f32 in SMEM        -- class weights
    z0_ref : (tile_r, 128) logits for class 0 (any float dtype)
    z1_ref : (tile_r, 128) logits for class 1
    lbl_ref: (tile_r, 128) int32 labels (-1 marks padding rows)
    out_ref: (1, 1, 128) f32         -- per-core partial, written once
    acc_ref: (1, 1) f32 VMEM scratch -- running accumulator
    """
    step = pl.program_id(1)

    @pl.when(step == 0)
    def _():
        acc_ref[...] = jnp.zeros_like(acc_ref)

    z0 = z0_ref[...].astype(jnp.float32)
    z1 = z1_ref[...].astype(jnp.float32)
    lbl = lbl_ref[...]

    # Elementwise, numerically-stable 2-class log-sum-exp.
    m = jnp.maximum(z0, z1)
    lse = m + jnp.log(jnp.exp(z0 - m) + jnp.exp(z1 - m))

    is0 = lbl == 0
    picked = jnp.where(is0, z0, z1)              # z[target]
    wsel = jnp.where(is0, w_ref[0], w_ref[1])    # weight[target]
    valid = (lbl >= 0).astype(jnp.float32)       # mask out padding rows

    # weighted NLL = weight[target] * (lse - z[target]); single fused reduction.
    partial = jnp.sum(valid * wsel * (lse - picked))
    acc_ref[...] += partial

    @pl.when(step == pl.num_programs(1) - 1)
    def _():
        out_ref[...] = jnp.broadcast_to(acc_ref[...].reshape(1, 1, 1), out_ref.shape)


@functools.partial(jax.jit, static_argnames=("tile_rows", "num_splits"))
def ce_loss(output, label, class_weight=None, *, tile_rows=1024, num_splits=2):
    """output: [N, 2] float logits (f32 or bf16); label: [N, 1] or [N] int.

    Returns scalar f32: sum_i weight[y_i] * (-log_softmax(output_i)[y_i]).
    """
    N, C = output.shape
    assert C == 2, "CE_Loss module is defined for 2 classes (weight=[1, 2])"
    if class_weight is None:
        class_weight = jnp.array([1.0, 2.0], dtype=jnp.float32)
    class_weight = class_weight.astype(jnp.float32).reshape(2)

    # Lane-dense packing: rows of 128 samples each.
    rows_needed = -(-N // _LANES)
    tile_r = min(tile_rows, _round_up(rows_needed, 16))       # >= 16 sublanes/block
    steps_per_split = -(-rows_needed // (num_splits * tile_r))
    rows_total = num_splits * steps_per_split * tile_r
    n_padded = rows_total * _LANES
    pad = n_padded - N

    z = jnp.pad(output, ((0, pad), (0, 0)))                    # keep input dtype
    z0 = z[:, 0].reshape(rows_total, _LANES)
    z1 = z[:, 1].reshape(rows_total, _LANES)

    lbl = label.reshape(-1).astype(jnp.int32)                  # == label.squeeze(1)
    lbl = jnp.pad(lbl, (0, pad), constant_values=-1).reshape(rows_total, _LANES)

    row_map = lambda c, s: (c * steps_per_split + s, 0)

    partials = pl.pallas_call(
        _ce_loss_kernel,
        out_shape=jax.ShapeDtypeStruct((num_splits, 1, _LANES), jnp.float32),
        grid=(num_splits, steps_per_split),
        in_specs=[
            pl.BlockSpec(memory_space=pltpu.MemorySpace.SMEM),     # class weights
            pl.BlockSpec((tile_r, _LANES), row_map),               # z0
            pl.BlockSpec((tile_r, _LANES), row_map),               # z1
            pl.BlockSpec((tile_r, _LANES), row_map),               # labels
        ],
        out_specs=pl.BlockSpec((1, 1, _LANES), lambda c, s: (c, 0, 0)),
        scratch_shapes=[pltpu.VMEM((1, 1), jnp.float32)],
        compiler_params=pltpu.CompilerParams(
            dimension_semantics=("parallel", "arbitrary"),
            vmem_limit_bytes=32 * 1024 * 1024,
        ),
    )(class_weight, z0, z1, lbl)

    # Sum the per-core partials (num_splits of them).
    return jnp.sum(partials[:, 0, 0])


def _ce_loss_reference(output, label, class_weight):
    # pure-JAX reference of nn.CrossEntropyLoss(weight=w, reduction='sum')
    label = label.reshape(-1)
    logp = jax.nn.log_softmax(output.astype(jnp.float32), axis=-1)
    picked = jnp.take_along_axis(logp, label[:, None], axis=-1)[:, 0]
    w = class_weight[label]
    return jnp.sum(-picked * w)


if __name__ == "__main__":
    key = jax.random.PRNGKey(0)
    k1, k2, k3, k4 = jax.random.split(key, 4)
    w = jnp.array([1.0, 2.0], dtype=jnp.float32)   # matches torch weight [1, 2]

    # Small shape consistent with the module: batch of 8, binary seizure classes.
    N, C = 8, 2
    output = jax.random.normal(k1, (N, C), dtype=jnp.float32)
    label = jax.random.randint(k2, (N, 1), 0, C, dtype=jnp.int32)

    loss = jax.block_until_ready(ce_loss(output, label))
    ref = _ce_loss_reference(output, label, w)
    assert jnp.allclose(loss, ref, rtol=1e-5, atol=1e-5), (loss, ref)

    # Second case: N not a multiple of 128, multiple reduction steps per core.
    N2 = 5000
    output2 = jax.random.normal(k3, (N2, C), dtype=jnp.float32)
    label2 = jax.random.randint(k4, (N2, 1), 0, C, dtype=jnp.int32)
    loss2 = jax.block_until_ready(ce_loss(output2, label2, tile_rows=16))
    ref2 = _ce_loss_reference(output2, label2, w)
    assert jnp.allclose(loss2, ref2, rtol=1e-4, atol=1e-2), (loss2, ref2)

    print("KERNEL_OK")
</pallas_src>

<mosaic_0001>
module attributes {stable_mosaic.version = 11 : i64} {
  func.func @_ce_loss_kernel(%arg0: i32, %arg1: i32, %arg2: memref<2xf32, #tpu.memory_space<smem>>, %arg3: memref<16x128xf32, #tpu.memory_space<vmem>>, %arg4: memref<16x128xf32, #tpu.memory_space<vmem>>, %arg5: memref<16x128xi32, #tpu.memory_space<vmem>>, %arg6: memref<1x1x128xf32, #tpu.memory_space<vmem>>, %arg7: memref<1x1xf32, #tpu.memory_space<vmem>>) attributes {dimension_semantics = [#tpu.dimension_semantics<parallel>, #tpu.dimension_semantics<arbitrary>], iteration_bounds = array<i64: 2, 1>, scalar_prefetch = 0 : i64, scratch_operands = 1 : i64, tpu.core_type = #tpu.core_type<tc>, window_params = [{transform_indices = @transform_0, window_bounds = array<i64: 2>}, {transform_indices = @transform_1, window_bounds = array<i64: 16, 128>}, {transform_indices = @transform_2, window_bounds = array<i64: 16, 128>}, {transform_indices = @transform_3, window_bounds = array<i64: 16, 128>}, {transform_indices = @transform_4, window_bounds = array<i64: 1, 1, 128>}]} {
    %c0_i32 = arith.constant 0 : i32
    %0 = arith.cmpi eq, %arg1, %c0_i32 : i32
    %1 = arith.extui %0 : i1 to i32
    %c0_i32_0 = arith.constant 0 : i32
    %2 = arith.cmpi ne, %1, %c0_i32_0 : i32
    scf.if %2 {
      %cst_15 = arith.constant 0.000000e+00 : f32
      %40 = vector.broadcast %cst_15 : f32 to vector<1x1xf32>
      %c0_16 = arith.constant 0 : index
      %c0_17 = arith.constant 0 : index
      %41 = vector.load %arg7[%c0_16, %c0_17] : memref<1x1xf32, #tpu.memory_space<vmem>>, vector<1x1xf32>
      tpu.vector_store %arg7[%c0_16, %c0_17], %40 {strides = array<i32>} : memref<1x1xf32, #tpu.memory_space<vmem>>, vector<1x1xf32>,
    } else {
    }
    %c0 = arith.constant 0 : index
    %c0_1 = arith.constant 0 : index
    %3 = vector.load %arg3[%c0, %c0_1] : memref<16x128xf32, #tpu.memory_space<vmem>>, vector<16x128xf32>
    %c0_2 = arith.constant 0 : index
    %c0_3 = arith.constant 0 : index
    %4 = vector.load %arg4[%c0_2, %c0_3] : memref<16x128xf32, #tpu.memory_space<vmem>>, vector<16x128xf32>
    %c0_4 = arith.constant 0 : index
    %c0_5 = arith.constant 0 : index
    %5 = vector.load %arg5[%c0_4, %c0_5] : memref<16x128xi32, #tpu.memory_space<vmem>>, vector<16x128xi32>
    %6 = arith.maximumf %3, %4 : vector<16x128xf32>
    %7 = arith.subf %3, %6 : vector<16x128xf32>
    %8 = math.exp %7 : vector<16x128xf32>
    %9 = arith.subf %4, %6 : vector<16x128xf32>
    %10 = math.exp %9 : vector<16x128xf32>
    %11 = arith.addf %8, %10 : vector<16x128xf32>
    %12 = math.log %11 : vector<16x128xf32>
    %13 = arith.addf %6, %12 : vector<16x128xf32>
    %c0_i32_6 = arith.constant 0 : i32
    %14 = vector.broadcast %c0_i32_6 : i32 to vector<16x128xi32>
    %15 = arith.cmpi eq, %5, %14 : vector<16x128xi32>
    %16 = arith.select %15, %3, %4 : vector<16x128xi1>, vector<16x128xf32>
    %c0_7 = arith.constant 0 : index
    %17 = memref.load %arg2[%c0_7] : memref<2xf32, #tpu.memory_space<smem>>
    %c1 = arith.constant 1 : index
    %18 = memref.load %arg2[%c1] : memref<2xf32, #tpu.memory_space<smem>>
    %19 = vector.broadcast %17 : f32 to vector<16x128xf32>
    %20 = vector.broadcast %18 : f32 to vector<16x128xf32>
    %21 = arith.select %15, %19, %20 : vector<16x128xi1>, vector<16x128xf32>
    %c0_i32_8 = arith.constant 0 : i32
    %22 = vector.broadcast %c0_i32_8 : i32 to vector<16x128xi32>
    %23 = arith.cmpi sge, %5, %22 : vector<16x128xi32>
    %24 = arith.extui %23 : vector<16x128xi1> to vector<16x128xi32>
    %25 = arith.sitofp %24 : vector<16x128xi32> to vector<16x128xf32>
    %26 = arith.mulf %25, %21 : vector<16x128xf32>
    %27 = arith.subf %13, %16 : vector<16x128xf32>
    %28 = arith.mulf %26, %27 : vector<16x128xf32>
    %29 = vector.shape_cast %28 : vector<16x128xf32> to vector<1x16x128xf32>
    %cst = arith.constant dense<0.000000e+00> : vector<1xf32>
    %30 = vector.multi_reduction <add>, %29, %cst [1, 2] : vector<1x16x128xf32> to vector<1xf32>
    %31 = vector.shape_cast %30 : vector<1xf32> to vector<1x1x1xf32>
    %32 = vector.extract %31[0, 0, 0] : f32 from vector<1x1x1xf32>
    %c0_9 = arith.constant 0 : index
    %c0_10 = arith.constant 0 : index
    %33 = vector.load %arg7[%c0_9, %c0_10] : memref<1x1xf32, #tpu.memory_space<vmem>>, vector<1x1xf32>
    %34 = vector.broadcast %32 : f32 to vector<1x1xf32>
    %35 = arith.addf %33, %34 : vector<1x1xf32>
    %c0_11 = arith.constant 0 : index
    %c0_12 = arith.constant 0 : index
    %36 = vector.load %arg7[%c0_11, %c0_12] : memref<1x1xf32, #tpu.memory_space<vmem>>, vector<1x1xf32>
    tpu.vector_store %arg7[%c0_11, %c0_12], %35 {strides = array<i32>} : memref<1x1xf32, #tpu.memory_space<vmem>>, vector<1x1xf32>,
    %c0_i32_13 = arith.constant 0 : i32
    %37 = arith.cmpi eq, %arg1, %c0_i32_13 : i32
    %38 = arith.extui %37 : i1 to i32
    %c0_i32_14 = arith.constant 0 : i32
    %39 = arith.cmpi ne, %38, %c0_i32_14 : i32
    scf.if %39 {
      %c0_15 = arith.constant 0 : index
      %c0_16 = arith.constant 0 : index
      %40 = vector.load %arg7[%c0_15, %c0_16] : memref<1x1xf32, #tpu.memory_space<vmem>>, vector<1x1xf32>
      %41 = vector.shape_cast %40 : vector<1x1xf32> to vector<1x1x1xf32>
      %42 = vector.shape_cast %41 : vector<1x1x1xf32> to vector<1x1x1xf32>
      %43 = vector.broadcast %42 : vector<1x1x1xf32> to vector<1x1x128xf32>
      %c0_17 = arith.constant 0 : index
      %c0_18 = arith.constant 0 : index
      %c0_19 = arith.constant 0 : index
      %44 = vector.load %arg6[%c0_17, %c0_18, %c0_19] : memref<1x1x128xf32, #tpu.memory_space<vmem>>, vector<1x1x128xf32>
      tpu.vector_store %arg6[%c0_17, %c0_18, %c0_19], %43 {strides = array<i32>} : memref<1x1x128xf32, #tpu.memory_space<vmem>>, vector<1x1x128xf32>,
    } else {
    }
    return
  }
  func.func @transform_0(%arg0: i32, %arg1: i32) -> i32 {
    %c0_i32 = arith.constant 0 : i32
    %c0_i32_0 = arith.constant 0 : i32
    return %c0_i32 : i32
  }
  func.func @transform_1(%arg0: i32, %arg1: i32) -> (i32, i32) {
    %c1_i32 = arith.constant 1 : i32
    %0 = arith.muli %arg0, %c1_i32 : i32
    %1 = arith.addi %0, %arg1 : i32
    %c0_i32 = arith.constant 0 : i32
    %c0_i32_0 = arith.constant 0 : i32
    return %1, %c0_i32 : i32, i32
  }
  func.func @transform_2(%arg0: i32, %arg1: i32) -> (i32, i32) {
    %c1_i32 = arith.constant 1 : i32
    %0 = arith.muli %arg0, %c1_i32 : i32
    %1 = arith.addi %0, %arg1 : i32
    %c0_i32 = arith.constant 0 : i32
    %c0_i32_0 = arith.constant 0 : i32
    return %1, %c0_i32 : i32, i32
  }
  func.func @transform_3(%arg0: i32, %arg1: i32) -> (i32, i32) {
    %c1_i32 = arith.constant 1 : i32
    %0 = arith.muli %arg0, %c1_i32 : i32
    %1 = arith.addi %0, %arg1 : i32
    %c0_i32 = arith.constant 0 : i32
    %c0_i32_0 = arith.constant 0 : i32
    return %1, %c0_i32 : i32, i32
  }
  func.func @transform_4(%arg0: i32, %arg1: i32) -> (i32, i32, i32) {
    %c0_i32 = arith.constant 0 : i32
    %c0_i32_0 = arith.constant 0 : i32
    %c0_i32_1 = arith.constant 0 : i32
    return %arg0, %c0_i32, %c0_i32_0 : i32, i32, i32
  }
}

</mosaic_0001>

<bundles_post_ra>
// kernel: ce_loss.1
= control target key start
LH: loop header
LB: loop body
LE: loop exit
PB: predicated region body
PF: predicated region fallthrough
CT: control target
= control target key end

     0   :  { %9 = vsyncpa [#allocation4], 0  ;;  %s602_s15 = smov 0   ;;  %s604_s16 = smov 0   ;;  %s652_s0 = inlined_call_operand.vmem [shape: f32[2], index: 0, kind: input, shape index: {}]   ;;  %s653_s1 = inlined_call_operand.vmem [shape: f32[32,128], index: 1, kind: input, shape index: {}]   ;;  %s654_s2 = inlined_call_operand.vmem [shape: f32[32,128], index: 2, kind: input, shape index: {}]   ;;  %s655_s3 = inlined_call_operand.vmem [shape: s32[32,128], index: 3, kind: input, shape index: {}]   ;;  %s656_s4 = inlined_call_operand.vmem [shape: f32[2,1,128], index: 4, kind: output, shape index: {}]  }
   0x1   :  { %s606_s17 = smov 0  }
   0x2 LB: > { %s461_s18 = sadd.s32 4294967295, %s572_s17   ;;  %s27_s19 = sadd.s32 1, %s568_s16  ;;  %s572_s17 = sphi %s606_s17, %s15_s17   ;;  %s568_s16 = sphi %s604_s16, %s658_s16   ;;  %s564_s15 = sphi %s602_s15, %s657_s15  }
   0x3   : > { %p29_p0 = scmp.ge.s32.totalorder %s27_s19, 2  ;;  %p463_p1 = scmp.ge.s32.totalorder %s572_s17, 1 }
   0x4   : > { %p163_p2 = scmp.lt.s32.totalorder %s572_s17, 3  ;;  %p489_p4 = scmp.eq.s32.totalorder %s461_s18, 0 }
   0x5   : > { %s660_s19 = smov (%p29_p0, %s27_s19), 0  ;;  %s175_s22 = sshll.u32 %s652_s0, 4  ;;  %s176_s22 = int_to_ptr.vmem [resolvable:$true] %s175_s22 }
   0x6   : > { %p164_p3 = pnand %p463_p1, %p163_p2  ;;  %s574_s23 = smov [#allocation3]  }
   0x8   : > { %p485_p5 = pneg %p164_p3  ;;  %221 = sbr.rel (%p164_p3) target bundleno = 366 (0x16e), region = 36 }
   0xa   : > { %p486_p6 = pnand %p489_p4, %p485_p5 }
   0xc   : > { %488 = dma.vmem_to_smem (!%p486_p6), %s176_s22, 16, %s574_s23, [#allocation4]  }
   0xd   : > { %559 = dma.done.wait (%p489_p4), [#allocation4], 16  }
   0xe   : > { %561 = vsyncadd (%p489_p4), [#allocation4], 4294967280 }
   0xf   : > { %228 = sfence }
  0x10   : > { %s468_s24 = sshll.u32 %s564_s15, 1  ;;  %vm291_vm0 = vcmask 0   ;;  %v575_v0 = vmov 0.0   ;;  %s325_s6 = sld [smem:[#allocation3]]  ;;  %v576_v51 = vmov 0  }
  0x11   : > { %p262_p7 = scmp.lt.s32.totalorder %s468_s24, 3  ;;  %292 = vst.msk [vmem:[#allocation2] sm:$0x1] %vm291_vm0, %v575_v0  ;;  %s474_s7 = sld [smem:[#allocation3 + $0x1]]  ;;  %518 = vset.pattern.permute.xlu0 %v576_v51 }
  0x12   : > { %p284_p8 = scmp.lt.s32.totalorder %s564_s15, 1 }
  0x13   : > { %s662_s24 = smov (!%p262_p7, %s468_s24), 3 }
  0x14   : > { %s469_s25 = sshll.u32 %s662_s24, 3  ;;  %s664_s15 = smov (!%p284_p8, %s564_s15), 1 }
  0x15   : > { %s265_s28 = scalar_lea.vmem %s653_s1, %s469_s25  ;;  %s273_s5 = scalar_lea.vmem %s654_s2, %s469_s25 }
  0x16   : > { %v293_v1 = vld [vmem:[%s265_s28] sm:$0xff]  ;;  %v294_v2 = vld [vmem:[%s265_s28 + $0x8] sm:$0xff]  ;;  %s281_s10 = scalar_lea.vmem %s655_s3, %s469_s25  ;;  %v327_v23 = vstv %s325_s6  ;;  %s286_s14 = scalar_lea.vmem %s656_s4, %s664_s15 }
  0x17   : > { %v295_v3 = vld [vmem:[%s273_s5] sm:$0xff]  ;;  %v296_v4 = vld [vmem:[%s273_s5 + $0x8] sm:$0xff]  ;;  %v328_v24 = vstv %s474_s7 }
  0x18   : > { %v299_v5 = vmax.f32 %v293_v1, %v295_v3  ;;  %v300_v6 = vmax.f32 %v294_v2, %v296_v4  ;;  %v297_v21 = vld [vmem:[%s281_s10] sm:$0xff]  ;;  %v298_v22 = vld [vmem:[%s281_s10 + $0x8] sm:$0xff] }
  0x19   : > { %vm321_vm1 = vcmp.eq.s32.totalorder %v297_v21, 0  ;;  %vm331_vm2 = vcmp.ge.s32.totalorder %v297_v21, 0  ;;  %vm322_vm3 = vcmp.eq.s32.totalorder %v298_v22, 0  ;;  %vm332_vm4 = vcmp.ge.s32.totalorder %v298_v22, 0  ;;  %v353_v52 = vld [vmem:[#allocation2] sm:$0x1] }
  0x1a   : > { %v301_v7 = vsub.f32 %v293_v1, %v299_v5  ;;  %v307_v8 = vsub.f32 %v295_v3, %v299_v5  ;;  %v302_v9 = vsub.f32 %v294_v2, %v300_v6  ;;  %v308_v10 = vsub.f32 %v296_v4, %v300_v6 }
  0x1b   : > { %v329_v26 = vsel %vm321_vm1, %v327_v23, %v328_v24  ;;  %v475_v27 = vsel %vm331_vm2, 1.0, %v575_v0  ;;  %v330_v30 = vsel %vm322_vm3, %v327_v23, %v328_v24  ;;  %v476_v31 = vsel %vm332_vm4, 1.0, %v575_v0 }
  0x1c   : > { %v303_v11 = vmul.f32 1.442695, %v301_v7  ;;  %v309_v12 = vmul.f32 1.442695, %v307_v8  ;;  %v305_v13 = vmul.f32 1.442695, %v302_v9  ;;  %v323_v33 = vsel %vm321_vm1, %v293_v1, %v295_v3 }
  0x1d   : > { %v311_v14 = vmul.f32 1.442695, %v308_v10  ;;  %v324_v35 = vsel %vm322_vm3, %v294_v2, %v296_v4  ;;  %v337_v36 = vmul.f32 %v475_v27, %v329_v26  ;;  %v338_v38 = vmul.f32 %v476_v31, %v330_v30 }
  0x1e   : > { %519 = vpow2.f32 %v303_v11 }
  0x1f   : > { %521 = vpow2.f32 %v305_v13 }
  0x20   : > { %523 = vpow2.f32 %v309_v12 }
  0x21   : > { %525 = vpow2.f32 %v311_v14 }
  0x24   : > { %v520_v15 = vpop.eup %519 }
  0x25   : > { %v522_v16 = vpop.eup %521 }
  0x26   : > { %v524_v17 = vpop.eup %523 }
  0x27   : > { %v526_v18 = vpop.eup %525  ;;  %v313_v19 = vadd.f32 %v524_v17, %v520_v15 }
  0x28   : > { %v314_v20 = vadd.f32 %v526_v18, %v522_v16 }
  0x29   : > { %527 = vlog2.f32 %v313_v19 }
  0x2a   : > { %529 = vlog2.f32 %v314_v20 }
  0x2f   : > { %v528_v25 = vpop.eup %527 }
  0x30   : > { %v530_v28 = vpop.eup %529  ;;  %v316_v29 = vmul.f32 0.6931472, %v528_v25 }
  0x31   : > { %v318_v32 = vmul.f32 0.6931472, %v530_v28 }
  0x32   : > { %v319_v34 = vadd.f32 %v316_v29, %v299_v5 }
  0x33   : > { %v320_v37 = vadd.f32 %v318_v32, %v300_v6 }
  0x34   : > { %v339_v39 = vsub.f32 %v319_v34, %v323_v33 }
  0x35   : > { %v340_v40 = vsub.f32 %v320_v37, %v324_v35 }
  0x36   : > { %v341_v41 = vmul.f32 %v339_v39, %v337_v36 }
  0x37   : > { %v342_v42 = vmul.f32 %v340_v40, %v338_v38 }
  0x39   : > { %v343_v43 = vadd.f32 %v342_v42, %v341_v41 }
  0x3b   : > { %344 = vadd.xlane.f32.xlu0 %v343_v43 }
  0xae   : > { %v345_v44 = vpop.xlane.xlu0 %344 }
  0xaf   : > { %v346_v45 = vrot.slane %v345_v44, 4 }
  0xb1   : > { %v347_v46 = vadd.f32 %v346_v45, %v345_v44 }
  0xb3   : > { %v348_v47 = vrot.slane %v347_v46, 2 }
  0xb5   : > { %v349_v48 = vadd.f32 %v348_v47, %v347_v46 }
  0xb7   : > { %v350_v49 = vrot.slane %v349_v48, 1 }
  0xb9   : > { %v351_v50 = vadd.f32 %v350_v49, %v349_v48 }
  0xbb   : > { %479 = vpush %v351_v50 }
  0xec   : > { %s480_s11 = spop %479 }
  0xed   : > { %v354_v53 = vstv %s480_s11 }
  0xee   : > { %v355_v54 = vadd.f32 %v354_v53, %v353_v52 }
  0xf0   : > { %357 = vst.msk [vmem:[#allocation2] sm:$0x1] %vm291_vm0, %v355_v54 }
  0xf7   : > { %v361_v55 = vld [vmem:[#allocation2] sm:$0x1] }
  0xf8   : > { %364 = vperm.xlu0 %518, %v361_v55  }
 0x16a   : > { %v365_v56 = vpop.permute.xlu0 %364 }
 0x16b   : > { %v367_v57 = vperm.slane %v365_v56, 0 }
 0x16d   : > { %368 = vst [vmem:[%s286_s14] sm:$0x1] %v367_v57 }
 0x16e PF: > { %s15_s17 = sadd.s32 1, %s572_s17   ;;  %s657_s15 = smov %s568_s16 }
 0x16f   : > { %p12_p9 = scmp.ge.s32.totalorder %s15_s17, 4   ;;  %s658_s16 = smov %s660_s19 }
 0x171   :  { %14 = sbr.rel (!%p12_p9) target bundleno = 2 (0x2), region = 85 }
 0x176   :  { %386 = vsyncpa [#allocation4], 1 }
 0x177   :  { %388 = vsyncpa [#allocation4 + $0x1], 1 }

</bundles_post_ra>
